<compile_context>
chip_gen: v6e
topology: v6e:2x2x1
jax: 0.10.0
libtpu: 0.0.40
codegen_flags: <defaults>
</compile_context>

<pallas_src>
import functools

import jax
import jax.numpy as jnp
from jax.experimental import pallas as pl
from jax.experimental.pallas import tpu as pltpu


def _round_up(a, b):
    return -(-a // b) * b


def _vq_kernel(x_ref, cb_ref, idx_ref, mind_ref, amin_ref):
    """One (token tile i, codebook chunk k) grid step.

    x_ref   : (Ep, TN)  -- token tile (tokens on lanes), row E is all-ones
    cb_ref  : (TK, Ep)  -- augmented codebook chunk [-2*C | ||c||^2 | 0-pad]
    idx_ref : (1, TN)   -- argmin indices (lane-dense, resident over k)
    mind_ref, amin_ref : (1, TN) VMEM scratch -- running min dist / argmin
    """
    k = pl.program_id(1)
    tile_k = cb_ref.shape[0]

    @pl.when(k == 0)
    def _():
        mind_ref[...] = jnp.full(mind_ref.shape, jnp.inf, mind_ref.dtype)
        amin_ref[...] = jnp.zeros(amin_ref.shape, amin_ref.dtype)

    # Surrogate squared distance directly from one MXU matmul:
    #   dist = (-2*C) @ x + ||c||^2 * 1   (||x||^2 dropped).
    dist = jnp.dot(cb_ref[...], x_ref[...],
                   preferred_element_type=jnp.float32)             # (TK, TN)

    # Chunk-local first minimum along codebook rows: sublane reduce gives a
    # lane-dense (1, TN) row directly.
    local_min = jnp.min(dist, axis=0, keepdims=True)                # (1, TN)
    row_iota = jax.lax.broadcasted_iota(jnp.int32, dist.shape, 0)   # (TK, TN)
    local_arg = jnp.min(jnp.where(dist == local_min, row_iota, tile_k),
                        axis=0, keepdims=True)                      # (1, TN)

    # Running update.  Strict '<' keeps the earliest chunk on ties and the
    # within-chunk argmin already takes the first minimum, so the global
    # result matches torch.argmin (first occurrence).
    prev_min = mind_ref[...]
    better = local_min < prev_min
    mind_ref[...] = jnp.where(better, local_min, prev_min)
    amin_ref[...] = jnp.where(better, local_arg + k * tile_k, amin_ref[...])

    @pl.when(k == pl.num_programs(1) - 1)
    def _():
        idx_ref[...] = amin_ref[...]


@functools.partial(jax.jit, static_argnames=("tile_n", "tile_k", "use_bf16"))
def vector_quantize(embeddings, codebook, *, tile_n=1024, tile_k=512,
                    use_bf16=False):
    """VectorQuantizer.forward.

    embeddings: float [B, E, H, W]   (PyTorch NCHW convention)
    codebook  : float [K, E]
    returns   : (quantized [B, E, H, W], indices [B, H, W] int32)
    """
    B, E, H, W = embeddings.shape
    K, E2 = codebook.shape
    assert E == E2

    N = B * H * W
    f32 = jnp.float32
    cdt = jnp.bfloat16 if use_bf16 else jnp.float32

    n128 = _round_up(N, 128)
    k128 = _round_up(K, 128)

    # Clamp tiles to the padded problem size; keep multiples of 128 lanes.
    tile_n = max(128, (min(tile_n, n128) // 128) * 128)
    # v7x has 2 TensorCores sharding the "parallel" token axis: keep >= 2
    # token blocks whenever the problem is big enough to split.
    if n128 // tile_n < 2 and n128 >= 256:
        tile_n = max(128, (n128 // 2) // 128 * 128)
    tile_k = max(128, (min(tile_k, k128) // 128) * 128)

    # One extra contraction column holds ||c||^2 (the c_sq fold).
    Ep = _round_up(E + 1, 128)
    Np = _round_up(N, tile_n)
    Kp = _round_up(K, tile_k)

    # Tokens-on-lanes layout; the transpose/reshape/pad/cast fuse into a
    # single XLA copy.  Row E is all-ones (pairs with the ||c||^2 column);
    # zero-padded token columns select index 0 and are sliced away later.
    x_flat = jnp.transpose(embeddings, (1, 0, 2, 3)).reshape(E, N).astype(f32)
    x_aug = jnp.concatenate([x_flat, jnp.ones((1, N), f32)], axis=0)
    x_aug = jnp.pad(x_aug, ((0, Ep - (E + 1)), (0, Np - N))).astype(cdt)

    # Augmented codebook: [-2*C | ||c||^2 | zeros].  Padded codebook rows get
    # ||c||^2 = 1e30 so they can never win the argmin (no inf/overflow).
    cb32 = codebook.astype(f32)
    c_sq = jnp.sum(cb32 * cb32, axis=-1, keepdims=True)             # (K, 1)
    cb_aug = jnp.concatenate([-2.0 * cb32, c_sq], axis=1)           # (K, E+1)
    cb_aug = jnp.pad(cb_aug, ((0, Kp - K), (0, Ep - (E + 1))))
    cb_aug = cb_aug.at[K:, E].set(1e30).astype(cdt)

    grid_n = Np // tile_n
    grid_k = Kp // tile_k

    # Deeper buffering on the codebook stream only when there are enough K
    # chunks for it to matter (hides the per-step cb DMA once the per-chunk
    # compute shrinks).
    if grid_k >= 3:
        cb_spec = pl.BlockSpec((tile_k, Ep), lambda i, k: (k, 0),
                               pipeline_mode=pl.Buffered(3))
    else:
        cb_spec = pl.BlockSpec((tile_k, Ep), lambda i, k: (k, 0))

    idx = pl.pallas_call(
        _vq_kernel,
        out_shape=jax.ShapeDtypeStruct((1, Np), jnp.int32),
        grid_spec=pltpu.PrefetchScalarGridSpec(
            num_scalar_prefetch=0,
            grid=(grid_n, grid_k),
            in_specs=[
                pl.BlockSpec((Ep, tile_n), lambda i, k: (0, i)),   # token tile
                cb_spec,                                            # codebook chunk
            ],
            out_specs=pl.BlockSpec((1, tile_n), lambda i, k: (0, i)),
            scratch_shapes=[
                pltpu.VMEM((1, tile_n), jnp.float32),   # running min distance
                pltpu.VMEM((1, tile_n), jnp.int32),     # running argmin
            ],
        ),
        compiler_params=pltpu.CompilerParams(
            dimension_semantics=("parallel", "arbitrary"),
            vmem_limit_bytes=64 * 1024 * 1024,
        ),
    )(x_aug, cb_aug)

    # Decode outside the kernel (exact codebook rows, no extra MXU work).
    idx_flat = idx[0, :N]                                           # (N,) int32
    quant_tok = jnp.take(codebook, idx_flat, axis=0)                # (N, E)
    quantized = jnp.transpose(quant_tok.reshape(B, H, W, E), (0, 3, 1, 2))
    indices = idx_flat.reshape(B, H, W)      # int32 (PyTorch returns int64)
    return quantized, indices


def init_codebook(key, codebook_size, embedding_dim):
    # Matches torch.nn.init.uniform_(weight, a=-1/K, b=1/K)
    init_size = 1.0 / codebook_size
    return jax.random.uniform(
        key, (codebook_size, embedding_dim),
        minval=-init_size, maxval=init_size, dtype=jnp.float32)


def _reference(embeddings, codebook):
    """Pure-JAX reference (same argmin-equivalent distance, f32 HIGHEST)."""
    B, E, H, W = embeddings.shape
    x = jnp.transpose(embeddings, (0, 2, 3, 1)).reshape(-1, E)
    xc = jnp.dot(x, codebook.T, precision=jax.lax.Precision.HIGHEST)
    dist = jnp.sum(codebook * codebook, -1)[None, :] - 2.0 * xc
    idx = jnp.argmin(dist, axis=-1).astype(jnp.int32)
    q = codebook[idx]
    quantized = jnp.transpose(q.reshape(B, H, W, E), (0, 3, 1, 2))
    return quantized, idx.reshape(B, H, W)


if __name__ == "__main__":
    key = jax.random.PRNGKey(0)
    k_cb, k_x = jax.random.split(key)

    codebook_size = 16
    embedding_dim = 4
    B, H, W = 2, 16, 16

    codebook = init_codebook(k_cb, codebook_size, embedding_dim)
    embeddings = jax.random.normal(k_x, (B, embedding_dim, H, W), dtype=jnp.float32)

    quantized, indices = vector_quantize(embeddings, codebook)
    quantized = jax.block_until_ready(quantized)
    indices = jax.block_until_ready(indices)

    # sanity check against pure-JAX reference
    q_ref, idx_ref = _reference(embeddings, codebook)
    assert quantized.shape == (B, embedding_dim, H, W)
    assert indices.shape == (B, H, W)
    assert jnp.array_equal(indices, idx_ref)
    assert jnp.allclose(quantized, q_ref, atol=1e-6)
    # decode consistency: quantized vectors are the selected codebook rows
    assert jnp.allclose(
        quantized, jnp.transpose(codebook[indices], (0, 3, 1, 2)), atol=1e-6)

    # bf16-distance fast path (3-4x MXU on v6e/v7x).  Near-tie argmins may
    # legitimately differ from the f32 reference, so only require strong
    # agreement plus exact decode consistency.
    q_bf16, idx_bf16 = vector_quantize(embeddings, codebook, use_bf16=True)
    idx_bf16 = jax.block_until_ready(idx_bf16)
    assert idx_bf16.shape == (B, H, W)
    assert float(jnp.mean((idx_bf16 == idx_ref).astype(jnp.float32))) > 0.8
    assert jnp.allclose(
        q_bf16, jnp.transpose(codebook[idx_bf16], (0, 3, 1, 2)), atol=1e-6)

    print("KERNEL_OK")
</pallas_src>

<mosaic_0001>
module attributes {stable_mosaic.version = 11 : i64} {
  func.func @_vq_kernel(%arg0: i32, %arg1: i32, %arg2: memref<128x256xf32, #tpu.memory_space<vmem>>, %arg3: memref<128x128xf32, #tpu.memory_space<vmem>>, %arg4: memref<1x256xi32, #tpu.memory_space<vmem>>, %arg5: memref<1x256xf32, #tpu.memory_space<vmem>>, %arg6: memref<1x256xi32, #tpu.memory_space<vmem>>) attributes {dimension_semantics = [#tpu.dimension_semantics<parallel>, #tpu.dimension_semantics<arbitrary>], iteration_bounds = array<i64: 2, 1>, scalar_prefetch = 0 : i64, scratch_operands = 2 : i64, tpu.core_type = #tpu.core_type<tc>, window_params = [{transform_indices = @transform_0, window_bounds = array<i64: 128, 256>}, {transform_indices = @transform_1, window_bounds = array<i64: 128, 128>}, {transform_indices = @transform_2, window_bounds = array<i64: 1, 256>}]} {
    %c0_i32 = arith.constant 0 : i32
    %0 = arith.cmpi eq, %arg1, %c0_i32 : i32
    %1 = arith.extui %0 : i1 to i32
    %c0_i32_0 = arith.constant 0 : i32
    %2 = arith.cmpi ne, %1, %c0_i32_0 : i32
    scf.if %2 {
      %cst_17 = arith.constant 0x7F800000 : f32
      %28 = vector.broadcast %cst_17 : f32 to vector<1x256xf32>
      %c0_18 = arith.constant 0 : index
      %c0_19 = arith.constant 0 : index
      %29 = vector.load %arg5[%c0_18, %c0_19] : memref<1x256xf32, #tpu.memory_space<vmem>>, vector<1x256xf32>
      tpu.vector_store %arg5[%c0_18, %c0_19], %28 {strides = array<i32>} : memref<1x256xf32, #tpu.memory_space<vmem>>, vector<1x256xf32>,
      %c0_i32_20 = arith.constant 0 : i32
      %30 = vector.broadcast %c0_i32_20 : i32 to vector<1x256xi32>
      %c0_21 = arith.constant 0 : index
      %c0_22 = arith.constant 0 : index
      %31 = vector.load %arg6[%c0_21, %c0_22] : memref<1x256xi32, #tpu.memory_space<vmem>>, vector<1x256xi32>
      tpu.vector_store %arg6[%c0_21, %c0_22], %30 {strides = array<i32>} : memref<1x256xi32, #tpu.memory_space<vmem>>, vector<1x256xi32>,
    } else {
    }
    %c0 = arith.constant 0 : index
    %c0_1 = arith.constant 0 : index
    %3 = vector.load %arg3[%c0, %c0_1] : memref<128x128xf32, #tpu.memory_space<vmem>>, vector<128x128xf32>
    %c0_2 = arith.constant 0 : index
    %c0_3 = arith.constant 0 : index
    %4 = vector.load %arg2[%c0_2, %c0_3] : memref<128x256xf32, #tpu.memory_space<vmem>>, vector<128x256xf32>
    %cst = arith.constant dense<0.000000e+00> : vector<128x256xf32>
    %5 = tpu.matmul %3, %4, %cst {dimension_numbers = #tpu.dot_dimension_numbers<[1], [0], [0], [1], [0, 0, 1, 1], [], []>} : vector<128x128xf32>, vector<128x256xf32>, vector<128x256xf32> -> vector<128x256xf32>
    %cst_4 = arith.constant dense<0x7F800000> : vector<256xf32>
    %6 = vector.multi_reduction <minimumf>, %5, %cst_4 [0] : vector<128x256xf32> to vector<256xf32>
    %7 = vector.shape_cast %6 : vector<256xf32> to vector<1x256xf32>
    %8 = tpu.iota {dimensions = array<i32: 0>} : vector<128x256xi32>
    %9 = vector.broadcast %7 : vector<1x256xf32> to vector<128x256xf32>
    %10 = arith.cmpf oeq, %5, %9 : vector<128x256xf32>
    %c128_i32 = arith.constant 128 : i32
    %11 = vector.broadcast %c128_i32 : i32 to vector<128x256xi32>
    %12 = arith.select %10, %8, %11 : vector<128x256xi1>, vector<128x256xi32>
    %cst_5 = arith.constant dense<2147483647> : vector<256xi32>
    %13 = vector.multi_reduction <minsi>, %12, %cst_5 [0] : vector<128x256xi32> to vector<256xi32>
    %14 = vector.shape_cast %13 : vector<256xi32> to vector<1x256xi32>
    %c0_6 = arith.constant 0 : index
    %c0_7 = arith.constant 0 : index
    %15 = vector.load %arg5[%c0_6, %c0_7] : memref<1x256xf32, #tpu.memory_space<vmem>>, vector<1x256xf32>
    %16 = arith.cmpf olt, %7, %15 : vector<1x256xf32>
    %17 = arith.select %16, %7, %15 : vector<1x256xi1>, vector<1x256xf32>
    %c0_8 = arith.constant 0 : index
    %c0_9 = arith.constant 0 : index
    %18 = vector.load %arg5[%c0_8, %c0_9] : memref<1x256xf32, #tpu.memory_space<vmem>>, vector<1x256xf32>
    tpu.vector_store %arg5[%c0_8, %c0_9], %17 {strides = array<i32>} : memref<1x256xf32, #tpu.memory_space<vmem>>, vector<1x256xf32>,
    %c128_i32_10 = arith.constant 128 : i32
    %19 = arith.muli %arg1, %c128_i32_10 : i32
    %20 = vector.broadcast %19 : i32 to vector<1x256xi32>
    %21 = arith.addi %14, %20 : vector<1x256xi32>
    %c0_11 = arith.constant 0 : index
    %c0_12 = arith.constant 0 : index
    %22 = vector.load %arg6[%c0_11, %c0_12] : memref<1x256xi32, #tpu.memory_space<vmem>>, vector<1x256xi32>
    %23 = arith.select %16, %21, %22 : vector<1x256xi1>, vector<1x256xi32>
    %c0_13 = arith.constant 0 : index
    %c0_14 = arith.constant 0 : index
    %24 = vector.load %arg6[%c0_13, %c0_14] : memref<1x256xi32, #tpu.memory_space<vmem>>, vector<1x256xi32>
    tpu.vector_store %arg6[%c0_13, %c0_14], %23 {strides = array<i32>} : memref<1x256xi32, #tpu.memory_space<vmem>>, vector<1x256xi32>,
    %c0_i32_15 = arith.constant 0 : i32
    %25 = arith.cmpi eq, %arg1, %c0_i32_15 : i32
    %26 = arith.extui %25 : i1 to i32
    %c0_i32_16 = arith.constant 0 : i32
    %27 = arith.cmpi ne, %26, %c0_i32_16 : i32
    scf.if %27 {
      %c0_17 = arith.constant 0 : index
      %c0_18 = arith.constant 0 : index
      %28 = vector.load %arg6[%c0_17, %c0_18] : memref<1x256xi32, #tpu.memory_space<vmem>>, vector<1x256xi32>
      %c0_19 = arith.constant 0 : index
      %c0_20 = arith.constant 0 : index
      %29 = vector.load %arg4[%c0_19, %c0_20] : memref<1x256xi32, #tpu.memory_space<vmem>>, vector<1x256xi32>
      tpu.vector_store %arg4[%c0_19, %c0_20], %28 {strides = array<i32>} : memref<1x256xi32, #tpu.memory_space<vmem>>, vector<1x256xi32>,
    } else {
    }
    return
  }
  func.func @transform_0(%arg0: i32, %arg1: i32) -> (i32, i32) {
    %c0_i32 = arith.constant 0 : i32
    %c0_i32_0 = arith.constant 0 : i32
    return %c0_i32, %arg0 : i32, i32
  }
  func.func @transform_1(%arg0: i32, %arg1: i32) -> (i32, i32) {
    %c0_i32 = arith.constant 0 : i32
    %c0_i32_0 = arith.constant 0 : i32
    return %arg1, %c0_i32 : i32, i32
  }
  func.func @transform_2(%arg0: i32, %arg1: i32) -> (i32, i32) {
    %c0_i32 = arith.constant 0 : i32
    %c0_i32_0 = arith.constant 0 : i32
    return %c0_i32, %arg0 : i32, i32
  }
}

</mosaic_0001>

<bundles_post_ra>
// kernel: vector_quantize.1
= control target key start
LH: loop header
LB: loop body
LE: loop exit
PB: predicated region body
PF: predicated region fallthrough
CT: control target
= control target key end

     0   :  { %s984_s9 = smov 0   ;;  %s986_s10 = smov 0   ;;  %s1596_s0 = inlined_call_operand.vmem [shape: f32[128,512], index: 0, kind: input, shape index: {}]   ;;  %s1597_s1 = inlined_call_operand.vmem [shape: f32[128,128], index: 1, kind: input, shape index: {}]   ;;  %s1598_s2 = inlined_call_operand.vmem [shape: s32[1,512], index: 2, kind: output, shape index: {}]  }
   0x1   :  { %s988_s11 = smov 0   ;;  %s990_s12 = smov 0  }
   0x2   :  { %s992_s13 = smov 0  }
   0x3 LB: > { %s24_s14 = sadd.s32 1, %s959_s12  ;;  %p38_p1 = scmp.ne.s32.totalorder %s951_s10, %s947_s9  ;;  %s963_s13 = sphi %s992_s13, %s12_s13   ;;  %s959_s12 = sphi %s990_s12, %s1605_s12   ;;  %s955_s11 = sphi %s988_s11, %s1604_s11   ;;  %s951_s10 = sphi %s986_s10, %s1603_s10   ;;  %s947_s9 = sphi %s984_s9, %s1602_s9  }
   0x4   : > { %p26_p0 = scmp.ge.s32.totalorder %s24_s14, 2  ;;  %p39_p2 = scmp.eq.s32.totalorder %s963_s13, 0 }
   0x5   : > { %s31_s16 = sadd.s32 1, %s951_s10  ;;  %p839_p5 = scmp.ge.s32.totalorder %s963_s13, 2 }
   0x6   : > { %s1607_s14 = smov (%p26_p0, %s24_s14), 0  ;;  %p40_p3 = por %p39_p2, %p38_p1 }
   0x7   : > { %s28_s15 = ssub.s32 %s959_s12, %s1607_s14  ;;  %125 = sbr.rel (%p839_p5) target bundleno = 32 (0x20), region = 20 }
   0x8   : > { %p29_p4 = scmp.eq.s32.totalorder %s28_s15, 0 }
   0xa   : > { %s1019_s17 = scalar_select %p29_p4, %s951_s10, %s31_s16  }
   0xc   : > { %128 = sbr.rel (!%p40_p3) target bundleno = 32 (0x20), region = 24  ;;  %s130_s18 = sand.u32 (%p40_p3), 1, %s951_s10  }
   0xd   : > { %s848_s19 = sshll.u32 (%p40_p3), %s959_s12, 4  ;;  %s840_s20 = sshll.u32 (%p40_p3), %s130_s18, 8 }
   0xe   : > { %s1027_s23 = scalar_lea.vmem (%p40_p3), %s1596_s0, %s848_s19  ;;  %s1032_s24 = scalar_lea.vmem (%p40_p3), [#allocation4], %s840_s20 }
   0xf   : > { %v148_v0 = vld [vmem:[%s1027_s23] sm:$0xff] (%p40_p3)  ;;  %v150_v1 = vld [vmem:[%s1027_s23 + $0x8] sm:$0xff] (%p40_p3) }
  0x10   : > { %v152_v2 = vld [vmem:[%s1027_s23 + $0x20] sm:$0xff] (%p40_p3)  ;;  %149 = vst [vmem:[%s1032_s24] sm:$0xff] (%p40_p3), %v148_v0  ;;  %151 = vst [vmem:[%s1032_s24 + $0x8] sm:$0xff] (%p40_p3), %v150_v1  ;;  %v154_v3 = vld [vmem:[%s1027_s23 + $0x28] sm:$0xff] (%p40_p3) }
  0x11   : > { %153 = vst [vmem:[%s1032_s24 + $0x10] sm:$0xff] %v152_v2  ;;  %v156_v4 = vld [vmem:[%s1027_s23 + $0x40] sm:$0xff]  ;;  %v158_v5 = vld [vmem:[%s1027_s23 + $0x48] sm:$0xff]  ;;  %155 = vst [vmem:[%s1032_s24 + $0x18] sm:$0xff] %v154_v3 }
  0x12   : > { %157 = vst [vmem:[%s1032_s24 + $0x20] sm:$0xff] %v156_v4  ;;  %159 = vst [vmem:[%s1032_s24 + $0x28] sm:$0xff] %v158_v5  ;;  %v160_v6 = vld [vmem:[%s1027_s23 + $0x60] sm:$0xff]  ;;  %v162_v7 = vld [vmem:[%s1027_s23 + $0x68] sm:$0xff] }
  0x13   : > { %v164_v8 = vld [vmem:[%s1027_s23 + $0x80] sm:$0xff]  ;;  %161 = vst [vmem:[%s1032_s24 + $0x30] sm:$0xff] %v160_v6  ;;  %163 = vst [vmem:[%s1032_s24 + $0x38] sm:$0xff] %v162_v7  ;;  %v166_v9 = vld [vmem:[%s1027_s23 + $0x88] sm:$0xff] }
  0x14   : > { %165 = vst [vmem:[%s1032_s24 + $0x40] sm:$0xff] %v164_v8  ;;  %v168_v10 = vld [vmem:[%s1027_s23 + $0xa0] sm:$0xff]  ;;  %v170_v11 = vld [vmem:[%s1027_s23 + $0xa8] sm:$0xff]  ;;  %167 = vst [vmem:[%s1032_s24 + $0x48] sm:$0xff] %v166_v9 }
  0x15   : > { %169 = vst [vmem:[%s1032_s24 + $0x50] sm:$0xff] %v168_v10  ;;  %171 = vst [vmem:[%s1032_s24 + $0x58] sm:$0xff] %v170_v11  ;;  %v172_v12 = vld [vmem:[%s1027_s23 + $0xc0] sm:$0xff]  ;;  %v174_v13 = vld [vmem:[%s1027_s23 + $0xc8] sm:$0xff] }
  0x16   : > { %v176_v14 = vld [vmem:[%s1027_s23 + $0xe0] sm:$0xff]  ;;  %173 = vst [vmem:[%s1032_s24 + $0x60] sm:$0xff] %v172_v12  ;;  %175 = vst [vmem:[%s1032_s24 + $0x68] sm:$0xff] %v174_v13  ;;  %v178_v15 = vld [vmem:[%s1027_s23 + $0xe8] sm:$0xff] }
  0x17   : > { %177 = vst [vmem:[%s1032_s24 + $0x70] sm:$0xff] %v176_v14  ;;  %v180_v16 = vld [vmem:[%s1027_s23 + $0x100] sm:$0xff]  ;;  %v182_v17 = vld [vmem:[%s1027_s23 + $0x108] sm:$0xff]  ;;  %179 = vst [vmem:[%s1032_s24 + $0x78] sm:$0xff] %v178_v15 }
  0x18   : > { %181 = vst [vmem:[%s1032_s24 + $0x80] sm:$0xff] %v180_v16  ;;  %183 = vst [vmem:[%s1032_s24 + $0x88] sm:$0xff] %v182_v17  ;;  %v184_v18 = vld [vmem:[%s1027_s23 + $0x120] sm:$0xff]  ;;  %v186_v19 = vld [vmem:[%s1027_s23 + $0x128] sm:$0xff] }
  0x19   : > { %v188_v20 = vld [vmem:[%s1027_s23 + $0x140] sm:$0xff]  ;;  %185 = vst [vmem:[%s1032_s24 + $0x90] sm:$0xff] %v184_v18  ;;  %187 = vst [vmem:[%s1032_s24 + $0x98] sm:$0xff] %v186_v19  ;;  %v190_v21 = vld [vmem:[%s1027_s23 + $0x148] sm:$0xff] }
  0x1a   : > { %189 = vst [vmem:[%s1032_s24 + $0xa0] sm:$0xff] %v188_v20  ;;  %v192_v22 = vld [vmem:[%s1027_s23 + $0x160] sm:$0xff]  ;;  %v194_v23 = vld [vmem:[%s1027_s23 + $0x168] sm:$0xff]  ;;  %191 = vst [vmem:[%s1032_s24 + $0xa8] sm:$0xff] %v190_v21 }
  0x1b   : > { %193 = vst [vmem:[%s1032_s24 + $0xb0] sm:$0xff] %v192_v22  ;;  %195 = vst [vmem:[%s1032_s24 + $0xb8] sm:$0xff] %v194_v23  ;;  %v196_v24 = vld [vmem:[%s1027_s23 + $0x180] sm:$0xff]  ;;  %v198_v25 = vld [vmem:[%s1027_s23 + $0x188] sm:$0xff] }
  0x1c   : > { %v200_v26 = vld [vmem:[%s1027_s23 + $0x1a0] sm:$0xff]  ;;  %197 = vst [vmem:[%s1032_s24 + $0xc0] sm:$0xff] %v196_v24  ;;  %199 = vst [vmem:[%s1032_s24 + $0xc8] sm:$0xff] %v198_v25  ;;  %v202_v27 = vld [vmem:[%s1027_s23 + $0x1a8] sm:$0xff] }
  0x1d   : > { %201 = vst [vmem:[%s1032_s24 + $0xd0] sm:$0xff] %v200_v26  ;;  %v204_v28 = vld [vmem:[%s1027_s23 + $0x1c0] sm:$0xff]  ;;  %v206_v29 = vld [vmem:[%s1027_s23 + $0x1c8] sm:$0xff]  ;;  %203 = vst [vmem:[%s1032_s24 + $0xd8] sm:$0xff] %v202_v27 }
  0x1e   : > { %205 = vst [vmem:[%s1032_s24 + $0xe0] sm:$0xff] %v204_v28  ;;  %207 = vst [vmem:[%s1032_s24 + $0xe8] sm:$0xff] %v206_v29  ;;  %v208_v30 = vld [vmem:[%s1027_s23 + $0x1e0] sm:$0xff]  ;;  %v210_v31 = vld [vmem:[%s1027_s23 + $0x1e8] sm:$0xff] }
  0x1f   : > { %209 = vst [vmem:[%s1032_s24 + $0xf0] sm:$0xff] %v208_v30  ;;  %211 = vst [vmem:[%s1032_s24 + $0xf8] sm:$0xff] %v210_v31 }
  0x20 PF: > { %p843_p6 = scmp.ge.s32.totalorder %s963_s13, 1  ;;  %p216_p7 = scmp.lt.s32.totalorder %s963_s13, 3 }
  0x22   : > { %p217_p8 = pnand %p843_p6, %p216_p7 }
  0x23   : > { %s223_s25 = sand.u32 (!%p217_p8), 1, %s947_s9   ;;  %s845_s15 = sshll.u32 (!%p217_p8), %s955_s11, 1 }
  0x24   : > { %220 = sbr.rel (%p217_p8) target bundleno = 386 (0x182), region = 47  ;;  %s844_s26 = sshll.u32 (!%p217_p8), %s223_s25, 8 }
  0x25   : > { %s1100_s27 = scalar_lea.vmem (!%p217_p8), [#allocation4], %s844_s26  ;;  %p256_p9 = scmp.lt.s32.totalorder (!%p217_p8), %s845_s15, 3 }
  0x29   : > { %v965_v32 = vmov 0.0   ;;  %v317_v33 = vld [vmem:[%s1100_s27 + $0xf8] sm:$0xff]  ;;  %v316_v34 = vld [vmem:[%s1100_s27 + $0xf0] sm:$0xff]  ;;  %v315_v35 = vld [vmem:[%s1100_s27 + $0xe8] sm:$0xff]  ;;  %v264_v17 = vlaneseq  ;;  %v966_v19 = vmov inf   ;;  %v967_v20 = vmov 0  }
  0x2a   : > { %382 = vmatprep.mubr.f32.mxu0 %v965_v32  ;;  %430 = vmatprep.mubr.f32.mxu1 %v965_v32  ;;  %v314_v36 = vld [vmem:[%s1100_s27 + $0xe0] sm:$0xff]  ;;  %v313_v37 = vld [vmem:[%s1100_s27 + $0xd8] sm:$0xff]  ;;  %v312_v38 = vld [vmem:[%s1100_s27 + $0xd0] sm:$0xff]  ;;  %s1609_s15 = smov (!%p256_p9, %s845_s15), 3 }
  0x2b   : > { %318 = vmatprep.subr.mxu0 %v317_v33  ;;  %849 = vmatprep.subr.mxu1 %v317_v33  ;;  %v311_v39 = vld [vmem:[%s1100_s27 + $0xc8] sm:$0xff]  ;;  %v310_v40 = vld [vmem:[%s1100_s27 + $0xc0] sm:$0xff]  ;;  %v309_v41 = vld [vmem:[%s1100_s27 + $0xb8] sm:$0xff]  ;;  %vm1197_vm0 = vcmp.lt.s32.totalorder %v264_v17, 256  ;;  %s258_s19 = scalar_lea.vmem %s1598_s2, %s1609_s15 }
  0x2c   : > { %319 = vmatpush1.msra.mxu0 %v316_v34  ;;  %865 = vmatpush1.msra.mxu1 %v316_v34  ;;  %v308_v42 = vld [vmem:[%s1100_s27 + $0xb0] sm:$0xff]  ;;  %v307_v43 = vld [vmem:[%s1100_s27 + $0xa8] sm:$0xff]  ;;  %v306_v44 = vld [vmem:[%s1100_s27 + $0xa0] sm:$0xff]  ;;  %268 = vst.msk [vmem:[#allocation2] sm:$0x3] %vm1197_vm0, %v966_v19 }
  0x2d   : > { %320 = vmatprep.subr.mxu0 %v315_v35  ;;  %850 = vmatprep.subr.mxu1 %v315_v35  ;;  %v305_v45 = vld [vmem:[%s1100_s27 + $0x98] sm:$0xff]  ;;  %v304_v46 = vld [vmem:[%s1100_s27 + $0x90] sm:$0xff]  ;;  %v303_v47 = vld [vmem:[%s1100_s27 + $0x88] sm:$0xff]  ;;  %269 = vst.msk [vmem:[#allocation3] sm:$0x3] %vm1197_vm0, %v967_v20 }
  0x2e   : > { %321 = vmatpush1.msra.mxu0 %v314_v36  ;;  %866 = vmatpush1.msra.mxu1 %v314_v36  ;;  %v302_v48 = vld [vmem:[%s1100_s27 + $0x80] sm:$0xff]  ;;  %v301_v49 = vld [vmem:[%s1100_s27 + $0x78] sm:$0xff]  ;;  %v300_v50 = vld [vmem:[%s1100_s27 + $0x70] sm:$0xff] }
  0x2f   : > { %322 = vmatprep.subr.mxu0 %v313_v37  ;;  %851 = vmatprep.subr.mxu1 %v313_v37  ;;  %v299_v51 = vld [vmem:[%s1100_s27 + $0x68] sm:$0xff]  ;;  %v298_v52 = vld [vmem:[%s1100_s27 + $0x60] sm:$0xff]  ;;  %v297_v53 = vld [vmem:[%s1100_s27 + $0x58] sm:$0xff] }
  0x30   : > { %323 = vmatpush1.msra.mxu0 %v312_v38  ;;  %867 = vmatpush1.msra.mxu1 %v312_v38  ;;  %v296_v54 = vld [vmem:[%s1100_s27 + $0x50] sm:$0xff]  ;;  %v295_v55 = vld [vmem:[%s1100_s27 + $0x48] sm:$0xff]  ;;  %v294_v56 = vld [vmem:[%s1100_s27 + $0x40] sm:$0xff] }
  0x31   : > { %324 = vmatprep.subr.mxu0 %v311_v39  ;;  %852 = vmatprep.subr.mxu1 %v311_v39  ;;  %v293_v57 = vld [vmem:[%s1100_s27 + $0x38] sm:$0xff]  ;;  %v292_v58 = vld [vmem:[%s1100_s27 + $0x30] sm:$0xff]  ;;  %v291_v59 = vld [vmem:[%s1100_s27 + $0x28] sm:$0xff] }
  0x32   : > { %325 = vmatpush1.msra.mxu0 %v310_v40  ;;  %868 = vmatpush1.msra.mxu1 %v310_v40  ;;  %v290_v60 = vld [vmem:[%s1100_s27 + $0x20] sm:$0xff]  ;;  %v289_v61 = vld [vmem:[%s1100_s27 + $0x18] sm:$0xff]  ;;  %v288_v62 = vld [vmem:[%s1100_s27 + $0x10] sm:$0xff] }
  0x33   : > { %326 = vmatprep.subr.mxu0 %v309_v41  ;;  %853 = vmatprep.subr.mxu1 %v309_v41  ;;  %v287_v63 = vld [vmem:[%s1100_s27 + $0x8] sm:$0xff]  ;;  %v286_v0 = vld [vmem:[%s1100_s27] sm:$0xff]  ;;  %v273_v7 = vld [vmem:[%s1597_s1 + $0x18] sm:$0xff] }
  0x34   : > { %327 = vmatpush1.msra.mxu0 %v308_v42  ;;  %869 = vmatpush1.msra.mxu1 %v308_v42  ;;  %v270_v1 = vld [vmem:[%s1597_s1] sm:$0xff]  ;;  %v271_v3 = vld [vmem:[%s1597_s1 + $0x8] sm:$0xff]  ;;  %v272_v5 = vld [vmem:[%s1597_s1 + $0x10] sm:$0xff] }
  0x35   : > { %328 = vmatprep.subr.mxu0 %v307_v43  ;;  %854 = vmatprep.subr.mxu1 %v307_v43  ;;  %v278_v2 = vld [vmem:[%s1597_s1 + $0x40] sm:$0xff]  ;;  %v279_v4 = vld [vmem:[%s1597_s1 + $0x48] sm:$0xff]  ;;  %v280_v6 = vld [vmem:[%s1597_s1 + $0x50] sm:$0xff] }
  0x36   : > { %329 = vmatpush1.msra.mxu0 %v306_v44  ;;  %870 = vmatpush1.msra.mxu1 %v306_v44  ;;  %v281_v8 = vld [vmem:[%s1597_s1 + $0x58] sm:$0xff]  ;;  %v274_v9 = vld [vmem:[%s1597_s1 + $0x20] sm:$0xff]  ;;  %v275_v11 = vld [vmem:[%s1597_s1 + $0x28] sm:$0xff] }
  0x37   : > { %330 = vmatprep.subr.mxu0 %v305_v45  ;;  %855 = vmatprep.subr.mxu1 %v305_v45  ;;  %v282_v10 = vld [vmem:[%s1597_s1 + $0x60] sm:$0xff]  ;;  %v283_v12 = vld [vmem:[%s1597_s1 + $0x68] sm:$0xff]  ;;  %v276_v13 = vld [vmem:[%s1597_s1 + $0x30] sm:$0xff] }
  0x38   : > { %331 = vmatpush1.msra.mxu0 %v304_v46  ;;  %871 = vmatpush1.msra.mxu1 %v304_v46  ;;  %v284_v14 = vld [vmem:[%s1597_s1 + $0x70] sm:$0xff]  ;;  %v277_v15 = vld [vmem:[%s1597_s1 + $0x38] sm:$0xff] }
  0x39   : > { %332 = vmatprep.subr.mxu0 %v303_v47  ;;  %856 = vmatprep.subr.mxu1 %v303_v47  ;;  %v285_v16 = vld [vmem:[%s1597_s1 + $0x78] sm:$0xff] }
  0x3a   : > { %333 = vmatpush1.msra.mxu0 %v302_v48  ;;  %872 = vmatpush1.msra.mxu1 %v302_v48 }
  0x3b   : > { %334 = vmatprep.subr.mxu0 %v301_v49  ;;  %857 = vmatprep.subr.mxu1 %v301_v49 }
  0x3c   : > { %335 = vmatpush1.msra.mxu0 %v300_v50  ;;  %873 = vmatpush1.msra.mxu1 %v300_v50 }
  0x3d   : > { %336 = vmatprep.subr.mxu0 %v299_v51  ;;  %858 = vmatprep.subr.mxu1 %v299_v51 }
  0x3e   : > { %337 = vmatpush1.msra.mxu0 %v298_v52  ;;  %874 = vmatpush1.msra.mxu1 %v298_v52 }
  0x3f   : > { %338 = vmatprep.subr.mxu0 %v297_v53  ;;  %859 = vmatprep.subr.mxu1 %v297_v53 }
  0x40   : > { %339 = vmatpush1.msra.mxu0 %v296_v54  ;;  %875 = vmatpush1.msra.mxu1 %v296_v54 }
  0x41   : > { %340 = vmatprep.subr.mxu0 %v295_v55  ;;  %860 = vmatprep.subr.mxu1 %v295_v55 }
  0x42   : > { %341 = vmatpush1.msra.mxu0 %v294_v56  ;;  %876 = vmatpush1.msra.mxu1 %v294_v56 }
  0x43   : > { %342 = vmatprep.subr.mxu0 %v293_v57  ;;  %861 = vmatprep.subr.mxu1 %v293_v57 }
  0x44   : > { %343 = vmatpush1.msra.mxu0 %v292_v58  ;;  %877 = vmatpush1.msra.mxu1 %v292_v58 }
  0x45   : > { %344 = vmatprep.subr.mxu0 %v291_v59  ;;  %862 = vmatprep.subr.mxu1 %v291_v59 }
  0x46   : > { %345 = vmatpush1.msra.mxu0 %v290_v60  ;;  %878 = vmatpush1.msra.mxu1 %v290_v60 }
  0x47   : > { %346 = vmatprep.subr.mxu0 %v289_v61  ;;  %863 = vmatprep.subr.mxu1 %v289_v61 }
  0x48   : > { %347 = vmatpush1.msra.mxu0 %v288_v62  ;;  %879 = vmatpush1.msra.mxu1 %v288_v62 }
  0x49   : > { %348 = vmatprep.subr.mxu0 %v287_v63  ;;  %864 = vmatprep.subr.mxu1 %v287_v63 }
  0x4a   : > { %349 = vmatpush1.msra.mxu0 %v286_v0  ;;  %880 = vmatpush1.msra.mxu1 %v286_v0 }
  0x4b   : > { %383 = vmatmul.mubr.f32.vlgmr.msra.gmra.mxu0 %v270_v1  ;;  %431 = vmatmul.mubr.f32.vlgmr.msra.gmra.mxu1 %v278_v2 }
  0x4c   : > { %388 = vmatprep.mubr.f32.mxu0 %v965_v32  ;;  %436 = vmatprep.mubr.f32.mxu1 %v965_v32 }
  0x4f   : > { %389 = vmatmul.mubr.f32.gmra.mxu0 %v271_v3  ;;  %437 = vmatmul.mubr.f32.gmra.mxu1 %v279_v4 }
  0x50   : > { %394 = vmatprep.mubr.f32.mxu0 %v965_v32  ;;  %442 = vmatprep.mubr.f32.mxu1 %v965_v32 }
  0x53   : > { %395 = vmatmul.mubr.f32.gmra.mxu0 %v272_v5  ;;  %443 = vmatmul.mubr.f32.gmra.mxu1 %v280_v6 }
  0x54   : > { %400 = vmatprep.mubr.f32.mxu0 %v965_v32  ;;  %448 = vmatprep.mubr.f32.mxu1 %v965_v32 }
  0x57   : > { %401 = vmatmul.mubr.f32.gmra.mxu0 %v273_v7  ;;  %449 = vmatmul.mubr.f32.gmra.mxu1 %v281_v8 }
  0x58   : > { %406 = vmatprep.mubr.f32.mxu0 %v965_v32  ;;  %454 = vmatprep.mubr.f32.mxu1 %v965_v32 }
  0x5b   : > { %407 = vmatmul.mubr.f32.gmra.mxu0 %v274_v9  ;;  %455 = vmatmul.mubr.f32.gmra.mxu1 %v282_v10 }
  0x5c   : > { %412 = vmatprep.mubr.f32.mxu0 %v965_v32  ;;  %460 = vmatprep.mubr.f32.mxu1 %v965_v32 }
  0x5f   : > { %413 = vmatmul.mubr.f32.gmra.mxu0 %v275_v11  ;;  %461 = vmatmul.mubr.f32.gmra.mxu1 %v283_v12 }
  0x60   : > { %418 = vmatprep.mubr.f32.mxu0 %v965_v32  ;;  %466 = vmatprep.mubr.f32.mxu1 %v965_v32 }
  0x63   : > { %419 = vmatmul.mubr.f32.gmra.mxu0 %v276_v13  ;;  %467 = vmatmul.mubr.f32.gmra.mxu1 %v284_v14 }
  0x64   : > { %424 = vmatprep.mubr.f32.mxu0 %v965_v32  ;;  %472 = vmatprep.mubr.f32.mxu1 %v965_v32 }
  0x67   : > { %425 = vmatmul.mubr.f32.gmra.mxu0 %v277_v15  ;;  %473 = vmatmul.mubr.f32.gmra.mxu1 %v285_v16 }
 0x10b   : > { %v1205_v21 = vpop.f32.mrf.mxu0  ;;  %v1207_v22 = vpop.f32.mrf.mxu1 }
 0x10d   : > { %v1209_v23 = vpop.f32.mrf.mxu0  ;;  %v1211_v24 = vpop.f32.mrf.mxu1 }
 0x10f   : > { %v1213_v25 = vpop.f32.mrf.mxu0  ;;  %v1215_v26 = vpop.f32.mrf.mxu1 }
 0x111   : > { %v1217_v27 = vpop.f32.mrf.mxu0  ;;  %v1219_v28 = vpop.f32.mrf.mxu1 }
 0x113   : > { %v1221_v29 = vpop.f32.mrf.mxu0  ;;  %v1223_v30 = vpop.f32.mrf.mxu1 }
 0x114   : > { %v479_v43 = vmin.f32 %v1205_v21, %v1221_v29 }
 0x115   : > { %v1225_v31 = vpop.f32.mrf.mxu0  ;;  %v1227_v32 = vpop.f32.mrf.mxu1 }
 0x116   : > { %v500_v46 = vmin.f32 %v1209_v23, %v1225_v31 }
 0x117   : > { %v1229_v33 = vpop.f32.mrf.mxu0  ;;  %v1231_v34 = vpop.f32.mrf.mxu1 }
 0x118   : > { %v480_v49 = vmin.f32 %v1213_v25, %v1229_v33 }
 0x119   : > { %v1233_v35 = vpop.f32.mrf.mxu0  ;;  %v1235_v36 = vpop.f32.mrf.mxu1 }
 0x11a   : > { %v501_v54 = vmin.f32 %v1217_v27, %v1233_v35 }
 0x11b   : > { %v1237_v37 = vpop.f32.mrf.mxu0  ;;  %v1239_v38 = vpop.f32.mrf.mxu1 }
 0x11c   : > { %v481_v47 = vmin.f32 %v479_v43, %v1237_v37 }
 0x11d   : > { %v1241_v39 = vpop.f32.mrf.mxu0  ;;  %v1243_v40 = vpop.f32.mrf.mxu1 }
 0x11e   : > { %v502_v50 = vmin.f32 %v500_v46, %v1241_v39 }
 0x11f   : > { %v1245_v41 = vpop.f32.mrf.mxu0  ;;  %v1247_v42 = vpop.f32.mrf.mxu1 }
 0x120   : > { %v482_v55 = vmin.f32 %v480_v49, %v1245_v41 }
 0x121   : > { %v1251_v44 = vpop.f32.mrf.mxu0  ;;  %v1253_v45 = vpop.f32.mrf.mxu1 }
 0x122   : > { %v503_v59 = vmin.f32 %v501_v54, %v1251_v44  ;;  %v1302_v54 = vshrl.u32 %v264_v17, 7 }
 0x123   : > { %v1258_v48 = vpop.f32.mrf.mxu0  ;;  %v1266_v53 = vpop.f32.mrf.mxu1 }
 0x124   : > { %v483_v51 = vmin.f32 %v481_v47, %v1258_v48  ;;  %v1319_v17 = vadd.s32 40, %v1302_v54 }
 0x125   : > { %v1264_v52 = vpop.f32.mrf.mxu0  ;;  %v1281_v0 = vpop.f32.mrf.mxu1 }
 0x126   : > { %v485_v56 = vmin.f32 %v483_v51, %v1207_v22  ;;  %v504_v57 = vmin.f32 %v502_v50, %v1264_v52 }
 0x127   : > { %v1273_v58 = vpop.f32.mrf.mxu0  ;;  %v1289_v7 = vpop.f32.mrf.mxu1 }
 0x128   : > { %v506_v60 = vmin.f32 %v504_v57, %v1211_v24  ;;  %v484_v61 = vmin.f32 %v482_v55, %v1273_v58  ;;  %v487_v62 = vmin.f32 %v485_v56, %v1223_v30  ;;  %v968_v57 = vmov 1966171168  }
 0x129   : > { %v1279_v63 = vpop.f32.mrf.mxu0  ;;  %v1297_v14 = vpop.f32.mrf.mxu1 }
 0x12a   : > { %v486_v1 = vmin.f32 %v484_v61, %v1215_v26  ;;  %v505_v2 = vmin.f32 %v503_v59, %v1279_v63  ;;  %v508_v3 = vmin.f32 %v506_v60, %v1227_v32  ;;  %v489_v5 = vmin.f32 %v487_v62, %v1239_v38 }
 0x12b   : > { %v700_v59 = vunpack.c.l.s4 %v968_v57  ;;  %v1305_v60 = vadd.s32 8, %v1302_v54  ;;  %v1308_v61 = vadd.s32 16, %v1302_v54 }
 0x12c   : > { %v507_v4 = vmin.f32 %v505_v2, %v1219_v28  ;;  %v488_v6 = vmin.f32 %v486_v1, %v1231_v34  ;;  %v510_v8 = vmin.f32 %v508_v3, %v1243_v40  ;;  %v491_v11 = vmin.f32 %v489_v5, %v1266_v53 }
 0x12d   : > { %v1313_v1 = vadd.s32 24, %v1302_v54  ;;  %v1316_v2 = vadd.s32 32, %v1302_v54  ;;  %v1322_v3 = vadd.s32 48, %v1302_v54  ;;  %v684_v5 = vsub.s32 0, %v1302_v54 }
 0x12e   : > { %v490_v9 = vmin.f32 %v488_v6, %v1247_v42  ;;  %v509_v10 = vmin.f32 %v507_v4, %v1235_v36  ;;  %v512_v15 = vmin.f32 %v510_v8, %v1281_v0  ;;  %v1325_v4 = vadd.s32 56, %v1302_v54 }
 0x12f   : > { %v688_v6 = vsub.s32 1, %v1302_v54  ;;  %v1330_v8 = vadd.s32 64, %v1302_v54 }
 0x130   : > { %v492_v12 = vmin.f32 %v490_v9, %v1289_v7  ;;  %v511_v13 = vmin.f32 %v509_v10, %v1253_v45  ;;  %v1333_v9 = vadd.s32 72, %v1302_v54  ;;  %v680_v10 = vld [vmem:[#allocation2] sm:$0x3] }
 0x132   : > { %v493_v16 = vmin.f32 %v491_v11, %v492_v12  ;;  %v513_v19 = vmin.f32 %v511_v13, %v1297_v14  ;;  %v701_v12 = vunpack.c.0.s8 %v700_v59  ;;  %v1336_v13 = vadd.s32 80, %v1302_v54 }
 0x134   : > { %v494_v20 = vrot.slane %v493_v16, 4  ;;  %v514_v43 = vmin.f32 %v512_v15, %v513_v19  ;;  %v1339_v15 = vadd.s32 88, %v1302_v54  ;;  %v1345_v19 = vadd.s32 104, %v1302_v54 }
 0x136   : > { %v495_v46 = vmin.f32 %v493_v16, %v494_v20  ;;  %v515_v47 = vrot.slane %v514_v43, 4  ;;  %v1342_v16 = vadd.s32 96, %v1302_v54  ;;  %v1356_v20 = vadd.s32 112, %v1302_v54 }
 0x138   : > { %v496_v49 = vrot.slane %v495_v46, 2  ;;  %v516_v50 = vmin.f32 %v514_v43, %v515_v47  ;;  %v1359_v43 = vadd.s32 120, %v1302_v54 }
 0x13a   : > { %v497_v51 = vmin.f32 %v495_v46, %v496_v49  ;;  %v517_v56 = vrot.slane %v516_v50, 2  ;;  %v1363_v46 = vrot.slane %v680_v10, %v684_v5 }
 0x13c   : > { %v498_v55 = vrot.slane %v497_v51, 1  ;;  %v518_v11 = vmin.f32 %v516_v50, %v517_v56 }
 0x13e   : > { %v1310_v62 = vmin.f32 %v497_v51, %v498_v55 }
 0x140   : > { %vm538_vm1 = vcmp.eq.f32.partialorder %v1205_v21, %v1310_v62  ;;  %vm540_vm2 = vcmp.eq.f32.partialorder %v1213_v25, %v1310_v62  ;;  %vm542_vm3 = vcmp.eq.f32.partialorder %v1221_v29, %v1310_v62  ;;  %vm544_vm4 = vcmp.eq.f32.partialorder %v1229_v33, %v1310_v62 }
 0x141   : > { %v1367_v21 = vrot.slane %v680_v10, %v688_v6  ;;  %vm546_vm5 = vcmp.eq.f32.partialorder %v1237_v37, %v1310_v62  ;;  %vm548_vm6 = vcmp.eq.f32.partialorder %v1245_v41, %v1310_v62  ;;  %v519_v25 = vrot.slane %v518_v11, 1 }
 0x142   : > { %v1374_v29 = vsub.s32 %v701_v12, %v1302_v54  ;;  %v570_v33 = vsel %vm538_vm1, %v1302_v54, 128  ;;  %v572_v47 = vsel %vm540_vm2, %v1305_v60, 128  ;;  %v574_v49 = vsel %vm542_vm3, %v1308_v61, 128 }
 0x143   : > { %v576_v50 = vsel %vm544_vm4, %v1313_v1, 128  ;;  %vm550_vm7 = vcmp.eq.f32.partialorder %v1258_v48, %v1310_v62  ;;  %vm552_vm8 = vcmp.eq.f32.partialorder %v1273_v58, %v1310_v62  ;;  %vm554_vm9 = vcmp.eq.f32.partialorder %v1207_v22, %v1310_v62 }
 0x144   : > { %vm556_vm10 = vcmp.eq.f32.partialorder %v1215_v26, %v1310_v62  ;;  %vm558_vm11 = vcmp.eq.f32.partialorder %v1223_v30, %v1310_v62  ;;  %vm560_vm12 = vcmp.eq.f32.partialorder %v1231_v34, %v1310_v62  ;;  %vm562_vm13 = vcmp.eq.f32.partialorder %v1239_v38, %v1310_v62 }
 0x145   : > { %vm564_vm14 = vcmp.eq.f32.partialorder %v1247_v42, %v1310_v62  ;;  %vm566_vm15 = vcmp.eq.f32.partialorder %v1266_v53, %v1310_v62  ;;  %vm602_vm2 = vcmp.lt.s32.totalorder %v570_v33, %v574_v49  ;;  %vm604_vm3 = vcmp.lt.s32.totalorder %v572_v47, %v576_v50 }
 0x146   : > { %v578_v51 = vsel %vm546_vm5, %v1316_v2, 128  ;;  %v580_v55 = vsel %vm548_vm6, %v1319_v17, 128  ;;  %v603_v56 = vsel %vm602_vm2, %v570_v33, %v574_v49  ;;  %v605_v57 = vsel %vm604_vm3, %v572_v47, %v576_v50 }
 0x147   : > { %v582_v59 = vsel %vm550_vm7, %v1322_v3, 128  ;;  %v584_v10 = vsel %vm552_vm8, %v1325_v4, 128  ;;  %vm606_vm4 = vcmp.lt.s32.totalorder %v603_v56, %v578_v51  ;;  %vm608_vm1 = vcmp.lt.s32.totalorder %v605_v57, %v580_v55 }
 0x148   : > { %v586_v37 = vsel %vm554_vm9, %v1330_v8, 128  ;;  %v588_v41 = vsel %vm556_vm10, %v1333_v9, 128  ;;  %v607_v12 = vsel %vm606_vm4, %v603_v56, %v578_v51  ;;  %v609_v48 = vsel %vm608_vm1, %v605_v57, %v580_v55 }
 0x149   : > { %v590_v58 = vsel %vm558_vm11, %v1336_v13, 128  ;;  %vm610_vm5 = vcmp.lt.s32.totalorder %v607_v12, %v582_v59  ;;  %vm612_vm6 = vcmp.lt.s32.totalorder %v609_v48, %v584_v10  ;;  %v1428_v33 = vmin.f32 %v518_v11, %v519_v25 }
 0x14a   : > { %v592_v22 = vsel %vm560_vm12, %v1339_v15, 128  ;;  %v611_v47 = vsel %vm610_vm5, %v607_v12, %v582_v59  ;;  %v613_v49 = vsel %vm612_vm6, %v609_v48, %v584_v10  ;;  %vm692_vm7 = vcmp.lt.f32.partialorder %v1310_v62, %v1363_v46 }
 0x14b   : > { %v594_v26 = vsel %vm562_vm13, %v1342_v16, 128  ;;  %v596_v30 = vsel %vm564_vm14, %v1345_v19, 128  ;;  %vm614_vm8 = vcmp.lt.s32.totalorder %v611_v47, %v586_v37  ;;  %vm616_vm9 = vcmp.lt.s32.totalorder %v613_v49, %v588_v41 }
 0x14c   : > { %v598_v34 = vsel %vm566_vm15, %v1356_v20, 128  ;;  %vm1601_vm10 = vcmp.eq.f32.partialorder %v1289_v7, %v1310_v62  ;;  %v615_v25 = vsel %vm614_vm8, %v611_v47, %v586_v37  ;;  %v617_v38 = vsel %vm616_vm9, %v613_v49, %v588_v41 }
 0x14d   : > { %v600_v11 = vsel %vm1601_vm10, %v1359_v43, 128  ;;  %vm618_vm11 = vcmp.lt.s32.totalorder %v615_v25, %v590_v58  ;;  %vm620_vm12 = vcmp.lt.s32.totalorder %v617_v38, %v592_v22  ;;  %v694_v42 = vsel %vm692_vm7, %v1310_v62, %v1363_v46 }
 0x14e   : > { %vm539_vm13 = vcmp.eq.f32.partialorder %v1209_v23, %v1428_v33  ;;  %v619_v53 = vsel %vm618_vm11, %v615_v25, %v590_v58  ;;  %v621_v50 = vsel %vm620_vm12, %v617_v38, %v592_v22  ;;  %vm541_vm14 = vcmp.eq.f32.partialorder %v1217_v27, %v1428_v33 }
 0x14f   : > { %vm543_vm15 = vcmp.eq.f32.partialorder %v1225_v31, %v1428_v33  ;;  %vm622_vm1 = vcmp.lt.s32.totalorder %v619_v53, %v594_v26  ;;  %vm624_vm2 = vcmp.lt.s32.totalorder %v621_v50, %v596_v30  ;;  %vm545_vm3 = vcmp.eq.f32.partialorder %v1233_v35, %v1428_v33 }
 0x150   : > { %vm547_vm4 = vcmp.eq.f32.partialorder %v1241_v39, %v1428_v33  ;;  %v623_v7 = vsel %vm622_vm1, %v619_v53, %v594_v26  ;;  %v625_v51 = vsel %vm624_vm2, %v621_v50, %v596_v30  ;;  %vm549_vm5 = vcmp.eq.f32.partialorder %v1251_v44, %v1428_v33 }
 0x151   : > { %vm551_vm6 = vcmp.eq.f32.partialorder %v1264_v52, %v1428_v33  ;;  %vm626_vm8 = vcmp.lt.s32.totalorder %v623_v7, %v598_v34  ;;  %vm628_vm9 = vcmp.lt.s32.totalorder %v625_v51, %v600_v11  ;;  %vm553_vm10 = vcmp.eq.f32.partialorder %v1279_v63, %v1428_v33 }
 0x152   : > { %vm555_vm11 = vcmp.eq.f32.partialorder %v1211_v24, %v1428_v33  ;;  %v627_v55 = vsel %vm626_vm8, %v623_v7, %v598_v34  ;;  %v629_v56 = vsel %vm628_vm9, %v625_v51, %v600_v11  ;;  %v571_v57 = vsel %vm539_vm13, %v1302_v54, 128 }
 0x153   : > { %v575_v59 = vsel %vm543_vm15, %v1308_v61, 128  ;;  %vm630_vm12 = vcmp.lt.s32.totalorder %v627_v55, %v629_v56  ;;  %vm557_vm1 = vcmp.eq.f32.partialorder %v1219_v28, %v1428_v33  ;;  %v573_v10 = vsel %vm541_vm14, %v1305_v60, 128 }
 0x154   : > { %v577_v23 = vsel %vm545_vm3, %v1313_v1, 128  ;;  %v631_v37 = vsel %vm630_vm12, %v627_v55, %v629_v56  ;;  %vm559_vm13 = vcmp.eq.f32.partialorder %v1227_v32, %v1428_v33  ;;  %vm561_vm15 = vcmp.eq.f32.partialorder %v1235_v36, %v1428_v33 }
 0x155   : > { %vm563_vm2 = vcmp.eq.f32.partialorder %v1243_v40, %v1428_v33  ;;  %v632_v31 = vrot.slane %v631_v37, 4  ;;  %vm565_vm8 = vcmp.eq.f32.partialorder %v1253_v45, %v1428_v33  ;;  %v579_v27 = vsel %vm547_vm4, %v1316_v2, 128 }
 0x156   : > { %vm641_vm14 = vcmp.lt.s32.totalorder %v571_v57, %v575_v59  ;;  %v581_v35 = vsel %vm549_vm5, %v1319_v17, 128  ;;  %vm643_vm3 = vcmp.lt.s32.totalorder %v573_v10, %v577_v23  ;;  %vm693_vm9 = vcmp.lt.f32.partialorder %v1428_v33, %v1367_v21 }
 0x157   : > { %v642_v60 = vsel %vm641_vm14, %v571_v57, %v575_v59  ;;  %v583_v61 = vsel %vm551_vm6, %v1322_v3, 128  ;;  %v644_v1 = vsel %vm643_vm3, %v573_v10, %v577_v23  ;;  %v695_v39 = vsel %vm693_vm9, %v1428_v33, %v1367_v21 }
 0x158   : > { %vm645_vm12 = vcmp.lt.s32.totalorder %v642_v60, %v579_v27  ;;  %vm633_vm4 = vcmp.lt.s32.totalorder %v631_v37, %v632_v31  ;;  %vm647_vm5 = vcmp.lt.s32.totalorder %v644_v1, %v581_v35  ;;  %v698_v2 = vcombine.low %v694_v42, %v695_v39 }
 0x159   : > { %v646_v44 = vsel %vm645_vm12, %v642_v60, %v579_v27  ;;  %vm567_vm14 = vcmp.eq.f32.partialorder %v1281_v0, %v1428_v33  ;;  %v585_v52 = vsel %vm553_vm10, %v1325_v4, 128  ;;  %v648_v17 = vsel %vm647_vm5, %v644_v1, %v581_v35 }
 0x15a   : > { %vm649_vm6 = vcmp.lt.s32.totalorder %v646_v44, %v583_v61  ;;  %v587_v3 = vsel %vm555_vm11, %v1330_v8, 128  ;;  %vm651_vm3 = vcmp.lt.s32.totalorder %v648_v17, %v585_v52  ;;  %v705_v12 = vrot.slane %v698_v2, %v1374_v29 }
 0x15b   : > { %v650_v41 = vsel %vm649_vm6, %v646_v44, %v583_v61  ;;  %v634_v48 = vsel %vm633_vm4, %v631_v37, %v632_v31  ;;  %v589_v58 = vsel %vm557_vm1, %v1333_v9, 128  ;;  %v652_v22 = vsel %vm651_vm3, %v648_v17, %v585_v52 }
 0x15c   : > { %vm653_vm12 = vcmp.lt.s32.totalorder %v650_v41, %v587_v3  ;;  %v591_v63 = vsel %vm559_vm13, %v1336_v13, 128  ;;  %vm655_vm10 = vcmp.lt.s32.totalorder %v652_v22, %v589_v58  ;;  %v712_v24 = vrot.slane %v705_v12, %v1374_v29 }
 0x15d   : > { %v654_v4 = vsel %vm653_vm12, %v650_v41, %v587_v3  ;;  %vm569_vm11 = vcmp.eq.f32.partialorder %v1297_v14, %v1428_v33  ;;  %v593_v28 = vsel %vm561_vm15, %v1339_v15, 128  ;;  %v656_v8 = vsel %vm655_vm10, %v652_v22, %v589_v58 }
 0x15e   : > { %vm657_vm1 = vcmp.lt.s32.totalorder %v654_v4, %v591_v63  ;;  %v635_v9 = vrot.slane %v634_v48, 2  ;;  %v595_v32 = vsel %vm563_vm2, %v1342_v16, 128  ;;  %vm659_vm13 = vcmp.lt.s32.totalorder %v656_v8, %v593_v28  ;;  %718 = vst.msk [vmem:[#allocation2] sm:$0x3] %vm1197_vm0, %v712_v24 }
 0x15f   : > { %v658_v13 = vsel %vm657_vm1, %v654_v4, %v591_v63  ;;  %v597_v14 = vsel %vm565_vm8, %v1345_v19, 128  ;;  %v660_v36 = vsel %vm659_vm13, %v656_v8, %v593_v28  ;;  %v599_v15 = vsel %vm567_vm14, %v1356_v20, 128  ;;  %v723_v20 = vld [vmem:[#allocation3] sm:$0x3] }
 0x160   : > { %vm661_vm15 = vcmp.lt.s32.totalorder %v658_v13, %v595_v32  ;;  %vm663_vm4 = vcmp.lt.s32.totalorder %v660_v36, %v597_v14  ;;  %v601_v40 = vsel %vm569_vm11, %v1359_v43, 128  ;;  %vm636_vm5 = vcmp.lt.s32.totalorder %v634_v48, %v635_v9 }
 0x161   : > { %v662_v47 = vsel %vm661_vm15, %v658_v13, %v595_v32  ;;  %v664_v16 = vsel %vm663_vm4, %v660_v36, %v597_v14  ;;  %v637_v45 = vsel %vm636_vm5, %v634_v48, %v635_v9  ;;  %v727_v43 = vrot.slane %v723_v20, %v684_v5 }
 0x162   : > { %vm665_vm2 = vcmp.lt.s32.totalorder %v662_v47, %v599_v15  ;;  %vm667_vm6 = vcmp.lt.s32.totalorder %v664_v16, %v601_v40  ;;  %v638_v34 = vrot.slane %v637_v45, 1  ;;  %v731_v42 = vrot.slane %v723_v20, %v688_v6 }
 0x163   : > { %v666_v49 = vsel %vm665_vm2, %v662_v47, %v599_v15  ;;  %v668_v26 = vsel %vm667_vm6, %v664_v16, %v601_v40 }
 0x164   : > { %vm669_vm3 = vcmp.lt.s32.totalorder %v666_v49, %v668_v26  ;;  %vm639_vm14 = vcmp.lt.s32.totalorder %v637_v45, %v638_v34 }
 0x165   : > { %v670_v19 = vsel %vm669_vm3, %v666_v49, %v668_v26  ;;  %v640_v53 = vsel %vm639_vm14, %v637_v45, %v638_v34 }
 0x166   : > { %v671_v30 = vrot.slane %v670_v19, 4  ;;  %v732_v7 = vsel %vm692_vm7, %v640_v53, %v727_v43 }
 0x168   : > { %vm672_vm8 = vcmp.lt.s32.totalorder %v670_v19, %v671_v30 }
 0x169   : > { %v673_v11 = vsel %vm672_vm8, %v670_v19, %v671_v30 }
 0x16a   : > { %v674_v0 = vrot.slane %v673_v11, 2 }
 0x16c   : > { %vm675_vm12 = vcmp.lt.s32.totalorder %v673_v11, %v674_v0 }
 0x16d   : > { %v676_v25 = vsel %vm675_vm12, %v673_v11, %v674_v0 }
 0x16e   : > { %v677_v38 = vrot.slane %v676_v25, 1 }
 0x170   : > { %vm678_vm10 = vcmp.lt.s32.totalorder %v676_v25, %v677_v38 }
 0x171   : > { %v679_v50 = vsel %vm678_vm10, %v676_v25, %v677_v38 }
 0x172   : > { %v733_v51 = vsel %vm693_vm9, %v679_v50, %v731_v42 }
 0x173   : > { %v734_v55 = vcombine.low %v732_v7, %v733_v51 }
 0x175   : > { %v741_v56 = vrot.slane %v734_v55, %v1374_v29 }
 0x177   : > { %v748_v5 = vrot.slane %v741_v56, %v1374_v29 }
 0x179   : > { %749 = vst.msk [vmem:[#allocation3] sm:$0x3] %vm1197_vm0, %v748_v5 }
 0x180   : > { %v753_v54 = vld [vmem:[#allocation3] sm:$0x3] }
 0x181   : > { %754 = vst.msk [vmem:[%s258_s19] sm:$0x3] %vm1197_vm0, %v753_v54 }
 0x182 PF: > { %s12_s13 = sadd.s32 1, %s963_s13   ;;  %s1602_s9 = smov %s951_s10 }
 0x183   : > { %p9_p10 = scmp.ge.s32.totalorder %s12_s13, 4   ;;  %s1603_s10 = smov %s1019_s17 }
 0x184   : > { %s1604_s11 = smov %s959_s12  ;;  %s1605_s12 = smov %s1607_s14 }
 0x185   :  { %11 = sbr.rel (!%p9_p10) target bundleno = 3 (0x3), region = 97 }

</bundles_post_ra>
